<compile_context>
chip_gen: v7x
topology: tpu7x:2x2x1
jax: 0.10.0
libtpu: 0.0.40
codegen_flags: <defaults>
</compile_context>

<pallas_src>
import jax
import jax.numpy as jnp
from jax import lax
from jax.experimental import pallas as pl
from jax.experimental.pallas import tpu as pltpu

_LANE = 128      # vreg lane width
_SUBLANE = 8     # f32 sublane count


def _rnn_fc_relu_kernel(x_ref, wih_ref, whh_ref, b_ref, wfc_ref, bfc_ref,
                        out_ref, hs_ref):
    """Whole sequence in one kernel invocation.

    x_ref   : (T*Bp, Ip)  time-major input, flattened over (time, batch), lane-padded
    wih_ref : (Ip, H)     W_ih^T (rows beyond I are zero)
    whh_ref : (H, H)      W_hh^T
    b_ref   : (1, H)      b_ih + b_hh (combined recurrent bias)
    wfc_ref : (H, Op)     W_fc^T (cols beyond O are zero)
    bfc_ref : (1, Op)     b_fc (lane-padded with zeros)
    out_ref : (T*Bp, Op)  time-major output, lane-dense
    hs_ref  : (T, Bp, H)  VMEM scratch: pre-activations, then hidden history
    """
    T, Bp, H = hs_ref.shape

    # ---- Hoisted input projection + combined bias, all timesteps at once.
    # (T*Bp, Ip) @ (Ip, H) + (1, H)  ->  stored time-major into history scratch.
    hs_ref[...] = (
        jnp.dot(x_ref[...], wih_ref[...], preferred_element_type=jnp.float32)
        + b_ref[...]
    ).reshape(T, Bp, H)

    whh = whh_ref[...]  # keep W_hh resident; loop body = 1 MXU push per step

    # ---- Serial recurrence; h carried in vregs; loop unrolled (T small, static).
    def step(t, h):
        h = jnp.tanh(hs_ref[t]
                     + jnp.dot(h, whh, preferred_element_type=jnp.float32))
        hs_ref[t] = h          # lane-dense (Bp, H=128) store of the hidden history
        return h

    lax.fori_loop(0, T, step, jnp.zeros((Bp, H), jnp.float32), unroll=True)

    # ---- Hoisted FC + ReLU over the whole sequence: one (T*Bp, H) @ (H, Op) GEMM.
    y = (jnp.dot(hs_ref[...].reshape(T * Bp, H), wfc_ref[...],
                 preferred_element_type=jnp.float32)
         + bfc_ref[...])
    out_ref[...] = jnp.maximum(y, 0.0).astype(out_ref.dtype)


def _round_up(n, m):
    return ((n + m - 1) // m) * m


@jax.jit
def rnn_model_forward(x, w_ih, w_hh, b_ih, b_hh, w_fc, b_fc):
    """x: (B, T, I) batch-first, float32.  Returns (B, T, O)."""
    B, T, I = x.shape
    H = w_hh.shape[0]
    O = w_fc.shape[0]

    Bp = max(_SUBLANE, _round_up(B, _SUBLANE))   # sublane-pad batch
    Ip = max(_LANE, _round_up(I, _LANE))         # lane-pad input features
    Op = max(_LANE, _round_up(O, _LANE))         # lane-pad output features

    # Glue (all tiny): batch/feature pad + time-major + flatten + pre-transpose.
    x_p = jnp.zeros((Bp, T, Ip), jnp.float32).at[:B, :, :I].set(
        x.astype(jnp.float32))
    x_tm = jnp.transpose(x_p, (1, 0, 2)).reshape(T * Bp, Ip)       # (T*Bp, Ip)

    wih_t = jnp.zeros((Ip, H), jnp.float32).at[:I].set(
        jnp.transpose(w_ih).astype(jnp.float32))                   # (Ip, H)
    whh_t = jnp.transpose(w_hh).astype(jnp.float32)                # (H, H)
    b_comb = (b_ih + b_hh).reshape(1, H).astype(jnp.float32)       # (1, H)
    wfc_t = jnp.zeros((H, Op), jnp.float32).at[:, :O].set(
        jnp.transpose(w_fc).astype(jnp.float32))                   # (H, Op)
    bfc_2d = jnp.zeros((1, Op), jnp.float32).at[:, :O].set(
        b_fc.astype(jnp.float32))                                  # (1, Op)

    vmem = pl.BlockSpec(memory_space=pltpu.MemorySpace.VMEM)

    out2d = pl.pallas_call(
        _rnn_fc_relu_kernel,
        out_shape=jax.ShapeDtypeStruct((T * Bp, Op), jnp.float32),
        in_specs=[vmem] * 6,
        out_specs=vmem,
        scratch_shapes=[pltpu.VMEM((T, Bp, H), jnp.float32)],
    )(x_tm, wih_t, whh_t, b_comb, wfc_t, bfc_2d)

    out_tm = out2d.reshape(T, Bp, Op)[:, :B, :O]                   # (T, B, O)
    return jnp.transpose(out_tm, (1, 0, 2))                        # (B, T, O)


def _reference_forward(x, w_ih, w_hh, b_ih, b_hh, w_fc, b_fc):
    """Pure-JAX reference matching PyTorch nn.RNN(batch_first=True)+Linear+ReLU."""
    B, T, I = x.shape
    H = w_hh.shape[0]

    def step(h, x_t):
        h = jnp.tanh(x_t @ w_ih.T + b_ih + h @ w_hh.T + b_hh)
        return h, h

    x_tm = jnp.transpose(x, (1, 0, 2))                             # (T, B, I)
    _, hs = lax.scan(step, jnp.zeros((B, H), jnp.float32), x_tm)
    out = hs @ w_fc.T + b_fc                                       # (T, B, O)
    out = jnp.maximum(out, 0.0)
    return jnp.transpose(out, (1, 0, 2))


if __name__ == "__main__":
    # Small shapes consistent with the module (input_size=1, output_size=1,
    # hidden_size=128).
    B, T, I, H, O = 2, 8, 1, 128, 1

    key = jax.random.PRNGKey(0)
    kx, k1, k2, k3, k4, k5, k6 = jax.random.split(key, 7)

    # Deterministic parameter init (PyTorch-style U(-1/sqrt(H), 1/sqrt(H))).
    bound = 1.0 / (H ** 0.5)
    w_ih = jax.random.uniform(k1, (H, I), jnp.float32, -bound, bound)   # weight_ih_l0
    w_hh = jax.random.uniform(k2, (H, H), jnp.float32, -bound, bound)   # weight_hh_l0
    b_ih = jax.random.uniform(k3, (H,), jnp.float32, -bound, bound)     # bias_ih_l0
    b_hh = jax.random.uniform(k4, (H,), jnp.float32, -bound, bound)     # bias_hh_l0
    w_fc = jax.random.uniform(k5, (O, H), jnp.float32, -bound, bound)   # fc.weight
    b_fc = jax.random.uniform(k6, (O,), jnp.float32, -bound, bound)     # fc.bias

    x = jax.random.normal(kx, (B, T, I), jnp.float32)

    out = rnn_model_forward(x, w_ih, w_hh, b_ih, b_hh, w_fc, b_fc)
    out = jax.block_until_ready(out)

    ref = _reference_forward(x, w_ih, w_hh, b_ih, b_hh, w_fc, b_fc)
    assert out.shape == (B, T, O), out.shape
    assert jnp.allclose(out, ref, atol=1e-3, rtol=1e-3), (
        "mismatch vs reference: max abs err = %e"
        % float(jnp.max(jnp.abs(out - ref))))

    print("KERNEL_OK")
</pallas_src>

<mosaic_0001>
module attributes {stable_mosaic.version = 11 : i64} {
  func.func @_rnn_fc_relu_kernel(%arg0: memref<64x128xf32, #tpu.memory_space<vmem>>, %arg1: memref<128x128xf32, #tpu.memory_space<vmem>>, %arg2: memref<128x128xf32, #tpu.memory_space<vmem>>, %arg3: memref<1x128xf32, #tpu.memory_space<vmem>>, %arg4: memref<128x128xf32, #tpu.memory_space<vmem>>, %arg5: memref<1x128xf32, #tpu.memory_space<vmem>>, %arg6: memref<64x128xf32, #tpu.memory_space<vmem>>, %arg7: memref<8x8x128xf32, #tpu.memory_space<vmem>>) attributes {dimension_semantics = [], scalar_prefetch = 0 : i64, scratch_operands = 1 : i64, tpu.core_type = #tpu.core_type<tc>} {
    %c0 = arith.constant 0 : index
    %c0_0 = arith.constant 0 : index
    %0 = vector.load %arg0[%c0, %c0_0] : memref<64x128xf32, #tpu.memory_space<vmem>>, vector<64x128xf32>
    %c0_1 = arith.constant 0 : index
    %c0_2 = arith.constant 0 : index
    %1 = vector.load %arg1[%c0_1, %c0_2] : memref<128x128xf32, #tpu.memory_space<vmem>>, vector<128x128xf32>
    %cst = arith.constant dense<0.000000e+00> : vector<64x128xf32>
    %2 = tpu.matmul %0, %1, %cst {dimension_numbers = #tpu.dot_dimension_numbers<[1], [0], [0], [1], [0, 0, 1, 1], [], []>} : vector<64x128xf32>, vector<128x128xf32>, vector<64x128xf32> -> vector<64x128xf32>
    %c0_3 = arith.constant 0 : index
    %c0_4 = arith.constant 0 : index
    %3 = vector.load %arg3[%c0_3, %c0_4] : memref<1x128xf32, #tpu.memory_space<vmem>>, vector<1x128xf32>
    %4 = vector.broadcast %3 : vector<1x128xf32> to vector<64x128xf32>
    %5 = arith.addf %2, %4 : vector<64x128xf32>
    %6 = vector.shape_cast %5 : vector<64x128xf32> to vector<8x8x128xf32>
    %c0_5 = arith.constant 0 : index
    %c0_6 = arith.constant 0 : index
    %c0_7 = arith.constant 0 : index
    %7 = vector.load %arg7[%c0_5, %c0_6, %c0_7] : memref<8x8x128xf32, #tpu.memory_space<vmem>>, vector<8x8x128xf32>
    tpu.vector_store %arg7[%c0_5, %c0_6, %c0_7], %6 {strides = array<i32>} : memref<8x8x128xf32, #tpu.memory_space<vmem>>, vector<8x8x128xf32>,
    %c0_8 = arith.constant 0 : index
    %c0_9 = arith.constant 0 : index
    %8 = vector.load %arg2[%c0_8, %c0_9] : memref<128x128xf32, #tpu.memory_space<vmem>>, vector<128x128xf32>
    %cst_10 = arith.constant 0.000000e+00 : f32
    %9 = vector.broadcast %cst_10 : f32 to vector<8x128xf32>
    %c0_i32 = arith.constant 0 : i32
    %10 = arith.index_cast %c0_i32 : i32 to index
    %c0_11 = arith.constant 0 : index
    %c0_12 = arith.constant 0 : index
    %11 = vector.load %arg7[%10, %c0_11, %c0_12] : memref<8x8x128xf32, #tpu.memory_space<vmem>>, vector<1x8x128xf32>
    %12 = vector.shape_cast %11 : vector<1x8x128xf32> to vector<8x128xf32>
    %cst_13 = arith.constant dense<0.000000e+00> : vector<8x128xf32>
    %13 = tpu.matmul %9, %8, %cst_13 {dimension_numbers = #tpu.dot_dimension_numbers<[1], [0], [0], [1], [0, 0, 1, 1], [], []>} : vector<8x128xf32>, vector<128x128xf32>, vector<8x128xf32> -> vector<8x128xf32>
    %14 = arith.addf %12, %13 : vector<8x128xf32>
    %15 = math.tanh %14 : vector<8x128xf32>
    %16 = arith.index_cast %c0_i32 : i32 to index
    %c0_14 = arith.constant 0 : index
    %c0_15 = arith.constant 0 : index
    %17 = vector.load %arg7[%16, %c0_14, %c0_15] : memref<8x8x128xf32, #tpu.memory_space<vmem>>, vector<1x8x128xf32>
    %18 = vector.shape_cast %17 : vector<1x8x128xf32> to vector<8x128xf32>
    %19 = vector.shape_cast %15 : vector<8x128xf32> to vector<1x8x128xf32>
    tpu.vector_store %arg7[%16, %c0_14, %c0_15], %19 {strides = array<i32>} : memref<8x8x128xf32, #tpu.memory_space<vmem>>, vector<1x8x128xf32>,
    %c1_i32 = arith.constant 1 : i32
    %20 = arith.index_cast %c1_i32 : i32 to index
    %c0_16 = arith.constant 0 : index
    %c0_17 = arith.constant 0 : index
    %21 = vector.load %arg7[%20, %c0_16, %c0_17] : memref<8x8x128xf32, #tpu.memory_space<vmem>>, vector<1x8x128xf32>
    %22 = vector.shape_cast %21 : vector<1x8x128xf32> to vector<8x128xf32>
    %cst_18 = arith.constant dense<0.000000e+00> : vector<8x128xf32>
    %23 = tpu.matmul %15, %8, %cst_18 {dimension_numbers = #tpu.dot_dimension_numbers<[1], [0], [0], [1], [0, 0, 1, 1], [], []>} : vector<8x128xf32>, vector<128x128xf32>, vector<8x128xf32> -> vector<8x128xf32>
    %24 = arith.addf %22, %23 : vector<8x128xf32>
    %25 = math.tanh %24 : vector<8x128xf32>
    %26 = arith.index_cast %c1_i32 : i32 to index
    %c0_19 = arith.constant 0 : index
    %c0_20 = arith.constant 0 : index
    %27 = vector.load %arg7[%26, %c0_19, %c0_20] : memref<8x8x128xf32, #tpu.memory_space<vmem>>, vector<1x8x128xf32>
    %28 = vector.shape_cast %27 : vector<1x8x128xf32> to vector<8x128xf32>
    %29 = vector.shape_cast %25 : vector<8x128xf32> to vector<1x8x128xf32>
    tpu.vector_store %arg7[%26, %c0_19, %c0_20], %29 {strides = array<i32>} : memref<8x8x128xf32, #tpu.memory_space<vmem>>, vector<1x8x128xf32>,
    %c2_i32 = arith.constant 2 : i32
    %30 = arith.index_cast %c2_i32 : i32 to index
    %c0_21 = arith.constant 0 : index
    %c0_22 = arith.constant 0 : index
    %31 = vector.load %arg7[%30, %c0_21, %c0_22] : memref<8x8x128xf32, #tpu.memory_space<vmem>>, vector<1x8x128xf32>
    %32 = vector.shape_cast %31 : vector<1x8x128xf32> to vector<8x128xf32>
    %cst_23 = arith.constant dense<0.000000e+00> : vector<8x128xf32>
    %33 = tpu.matmul %25, %8, %cst_23 {dimension_numbers = #tpu.dot_dimension_numbers<[1], [0], [0], [1], [0, 0, 1, 1], [], []>} : vector<8x128xf32>, vector<128x128xf32>, vector<8x128xf32> -> vector<8x128xf32>
    %34 = arith.addf %32, %33 : vector<8x128xf32>
    %35 = math.tanh %34 : vector<8x128xf32>
    %36 = arith.index_cast %c2_i32 : i32 to index
    %c0_24 = arith.constant 0 : index
    %c0_25 = arith.constant 0 : index
    %37 = vector.load %arg7[%36, %c0_24, %c0_25] : memref<8x8x128xf32, #tpu.memory_space<vmem>>, vector<1x8x128xf32>
    %38 = vector.shape_cast %37 : vector<1x8x128xf32> to vector<8x128xf32>
    %39 = vector.shape_cast %35 : vector<8x128xf32> to vector<1x8x128xf32>
    tpu.vector_store %arg7[%36, %c0_24, %c0_25], %39 {strides = array<i32>} : memref<8x8x128xf32, #tpu.memory_space<vmem>>, vector<1x8x128xf32>,
    %c3_i32 = arith.constant 3 : i32
    %40 = arith.index_cast %c3_i32 : i32 to index
    %c0_26 = arith.constant 0 : index
    %c0_27 = arith.constant 0 : index
    %41 = vector.load %arg7[%40, %c0_26, %c0_27] : memref<8x8x128xf32, #tpu.memory_space<vmem>>, vector<1x8x128xf32>
    %42 = vector.shape_cast %41 : vector<1x8x128xf32> to vector<8x128xf32>
    %cst_28 = arith.constant dense<0.000000e+00> : vector<8x128xf32>
    %43 = tpu.matmul %35, %8, %cst_28 {dimension_numbers = #tpu.dot_dimension_numbers<[1], [0], [0], [1], [0, 0, 1, 1], [], []>} : vector<8x128xf32>, vector<128x128xf32>, vector<8x128xf32> -> vector<8x128xf32>
    %44 = arith.addf %42, %43 : vector<8x128xf32>
    %45 = math.tanh %44 : vector<8x128xf32>
    %46 = arith.index_cast %c3_i32 : i32 to index
    %c0_29 = arith.constant 0 : index
    %c0_30 = arith.constant 0 : index
    %47 = vector.load %arg7[%46, %c0_29, %c0_30] : memref<8x8x128xf32, #tpu.memory_space<vmem>>, vector<1x8x128xf32>
    %48 = vector.shape_cast %47 : vector<1x8x128xf32> to vector<8x128xf32>
    %49 = vector.shape_cast %45 : vector<8x128xf32> to vector<1x8x128xf32>
    tpu.vector_store %arg7[%46, %c0_29, %c0_30], %49 {strides = array<i32>} : memref<8x8x128xf32, #tpu.memory_space<vmem>>, vector<1x8x128xf32>,
    %c4_i32 = arith.constant 4 : i32
    %50 = arith.index_cast %c4_i32 : i32 to index
    %c0_31 = arith.constant 0 : index
    %c0_32 = arith.constant 0 : index
    %51 = vector.load %arg7[%50, %c0_31, %c0_32] : memref<8x8x128xf32, #tpu.memory_space<vmem>>, vector<1x8x128xf32>
    %52 = vector.shape_cast %51 : vector<1x8x128xf32> to vector<8x128xf32>
    %cst_33 = arith.constant dense<0.000000e+00> : vector<8x128xf32>
    %53 = tpu.matmul %45, %8, %cst_33 {dimension_numbers = #tpu.dot_dimension_numbers<[1], [0], [0], [1], [0, 0, 1, 1], [], []>} : vector<8x128xf32>, vector<128x128xf32>, vector<8x128xf32> -> vector<8x128xf32>
    %54 = arith.addf %52, %53 : vector<8x128xf32>
    %55 = math.tanh %54 : vector<8x128xf32>
    %56 = arith.index_cast %c4_i32 : i32 to index
    %c0_34 = arith.constant 0 : index
    %c0_35 = arith.constant 0 : index
    %57 = vector.load %arg7[%56, %c0_34, %c0_35] : memref<8x8x128xf32, #tpu.memory_space<vmem>>, vector<1x8x128xf32>
    %58 = vector.shape_cast %57 : vector<1x8x128xf32> to vector<8x128xf32>
    %59 = vector.shape_cast %55 : vector<8x128xf32> to vector<1x8x128xf32>
    tpu.vector_store %arg7[%56, %c0_34, %c0_35], %59 {strides = array<i32>} : memref<8x8x128xf32, #tpu.memory_space<vmem>>, vector<1x8x128xf32>,
    %c5_i32 = arith.constant 5 : i32
    %60 = arith.index_cast %c5_i32 : i32 to index
    %c0_36 = arith.constant 0 : index
    %c0_37 = arith.constant 0 : index
    %61 = vector.load %arg7[%60, %c0_36, %c0_37] : memref<8x8x128xf32, #tpu.memory_space<vmem>>, vector<1x8x128xf32>
    %62 = vector.shape_cast %61 : vector<1x8x128xf32> to vector<8x128xf32>
    %cst_38 = arith.constant dense<0.000000e+00> : vector<8x128xf32>
    %63 = tpu.matmul %55, %8, %cst_38 {dimension_numbers = #tpu.dot_dimension_numbers<[1], [0], [0], [1], [0, 0, 1, 1], [], []>} : vector<8x128xf32>, vector<128x128xf32>, vector<8x128xf32> -> vector<8x128xf32>
    %64 = arith.addf %62, %63 : vector<8x128xf32>
    %65 = math.tanh %64 : vector<8x128xf32>
    %66 = arith.index_cast %c5_i32 : i32 to index
    %c0_39 = arith.constant 0 : index
    %c0_40 = arith.constant 0 : index
    %67 = vector.load %arg7[%66, %c0_39, %c0_40] : memref<8x8x128xf32, #tpu.memory_space<vmem>>, vector<1x8x128xf32>
    %68 = vector.shape_cast %67 : vector<1x8x128xf32> to vector<8x128xf32>
    %69 = vector.shape_cast %65 : vector<8x128xf32> to vector<1x8x128xf32>
    tpu.vector_store %arg7[%66, %c0_39, %c0_40], %69 {strides = array<i32>} : memref<8x8x128xf32, #tpu.memory_space<vmem>>, vector<1x8x128xf32>,
    %c6_i32 = arith.constant 6 : i32
    %70 = arith.index_cast %c6_i32 : i32 to index
    %c0_41 = arith.constant 0 : index
    %c0_42 = arith.constant 0 : index
    %71 = vector.load %arg7[%70, %c0_41, %c0_42] : memref<8x8x128xf32, #tpu.memory_space<vmem>>, vector<1x8x128xf32>
    %72 = vector.shape_cast %71 : vector<1x8x128xf32> to vector<8x128xf32>
    %cst_43 = arith.constant dense<0.000000e+00> : vector<8x128xf32>
    %73 = tpu.matmul %65, %8, %cst_43 {dimension_numbers = #tpu.dot_dimension_numbers<[1], [0], [0], [1], [0, 0, 1, 1], [], []>} : vector<8x128xf32>, vector<128x128xf32>, vector<8x128xf32> -> vector<8x128xf32>
    %74 = arith.addf %72, %73 : vector<8x128xf32>
    %75 = math.tanh %74 : vector<8x128xf32>
    %76 = arith.index_cast %c6_i32 : i32 to index
    %c0_44 = arith.constant 0 : index
    %c0_45 = arith.constant 0 : index
    %77 = vector.load %arg7[%76, %c0_44, %c0_45] : memref<8x8x128xf32, #tpu.memory_space<vmem>>, vector<1x8x128xf32>
    %78 = vector.shape_cast %77 : vector<1x8x128xf32> to vector<8x128xf32>
    %79 = vector.shape_cast %75 : vector<8x128xf32> to vector<1x8x128xf32>
    tpu.vector_store %arg7[%76, %c0_44, %c0_45], %79 {strides = array<i32>} : memref<8x8x128xf32, #tpu.memory_space<vmem>>, vector<1x8x128xf32>,
    %c7_i32 = arith.constant 7 : i32
    %80 = arith.index_cast %c7_i32 : i32 to index
    %c0_46 = arith.constant 0 : index
    %c0_47 = arith.constant 0 : index
    %81 = vector.load %arg7[%80, %c0_46, %c0_47] : memref<8x8x128xf32, #tpu.memory_space<vmem>>, vector<1x8x128xf32>
    %82 = vector.shape_cast %81 : vector<1x8x128xf32> to vector<8x128xf32>
    %cst_48 = arith.constant dense<0.000000e+00> : vector<8x128xf32>
    %83 = tpu.matmul %75, %8, %cst_48 {dimension_numbers = #tpu.dot_dimension_numbers<[1], [0], [0], [1], [0, 0, 1, 1], [], []>} : vector<8x128xf32>, vector<128x128xf32>, vector<8x128xf32> -> vector<8x128xf32>
    %84 = arith.addf %82, %83 : vector<8x128xf32>
    %85 = math.tanh %84 : vector<8x128xf32>
    %86 = arith.index_cast %c7_i32 : i32 to index
    %c0_49 = arith.constant 0 : index
    %c0_50 = arith.constant 0 : index
    %87 = vector.load %arg7[%86, %c0_49, %c0_50] : memref<8x8x128xf32, #tpu.memory_space<vmem>>, vector<1x8x128xf32>
    %88 = vector.shape_cast %87 : vector<1x8x128xf32> to vector<8x128xf32>
    %89 = vector.shape_cast %85 : vector<8x128xf32> to vector<1x8x128xf32>
    tpu.vector_store %arg7[%86, %c0_49, %c0_50], %89 {strides = array<i32>} : memref<8x8x128xf32, #tpu.memory_space<vmem>>, vector<1x8x128xf32>,
    %c8_i32 = arith.constant 8 : i32
    %c0_51 = arith.constant 0 : index
    %c0_52 = arith.constant 0 : index
    %c0_53 = arith.constant 0 : index
    %90 = vector.load %arg7[%c0_51, %c0_52, %c0_53] : memref<8x8x128xf32, #tpu.memory_space<vmem>>, vector<8x8x128xf32>
    %91 = vector.shape_cast %90 : vector<8x8x128xf32> to vector<64x128xf32>
    %c0_54 = arith.constant 0 : index
    %c0_55 = arith.constant 0 : index
    %92 = vector.load %arg4[%c0_54, %c0_55] : memref<128x128xf32, #tpu.memory_space<vmem>>, vector<128x128xf32>
    %cst_56 = arith.constant dense<0.000000e+00> : vector<64x128xf32>
    %93 = tpu.matmul %91, %92, %cst_56 {dimension_numbers = #tpu.dot_dimension_numbers<[1], [0], [0], [1], [0, 0, 1, 1], [], []>} : vector<64x128xf32>, vector<128x128xf32>, vector<64x128xf32> -> vector<64x128xf32>
    %c0_57 = arith.constant 0 : index
    %c0_58 = arith.constant 0 : index
    %94 = vector.load %arg5[%c0_57, %c0_58] : memref<1x128xf32, #tpu.memory_space<vmem>>, vector<1x128xf32>
    %95 = vector.broadcast %94 : vector<1x128xf32> to vector<64x128xf32>
    %96 = arith.addf %93, %95 : vector<64x128xf32>
    %cst_59 = arith.constant 0.000000e+00 : f32
    %97 = vector.broadcast %cst_59 : f32 to vector<64x128xf32>
    %98 = arith.maximumf %96, %97 : vector<64x128xf32>
    %c0_60 = arith.constant 0 : index
    %c0_61 = arith.constant 0 : index
    %99 = vector.load %arg6[%c0_60, %c0_61] : memref<64x128xf32, #tpu.memory_space<vmem>>, vector<64x128xf32>
    tpu.vector_store %arg6[%c0_60, %c0_61], %98 {strides = array<i32>} : memref<64x128xf32, #tpu.memory_space<vmem>>, vector<64x128xf32>,
    return
  }
}

</mosaic_0001>

<bundles_post_ra>
// kernel: rnn_model_forward.1
= control target key start
LH: loop header
LB: loop body
LE: loop exit
PB: predicated region body
PF: predicated region fallthrough
CT: control target
= control target key end

     0   :  { %v1767_v2 = vmov 0.0|0.0   ;;  %vm1768_vm0 = vmmov 0   ;;  %v1769_v4 = vmov 0.0   ;;  %s2206_s1 = inlined_call_operand.vmem [shape: f32[128,128], index: 1, kind: input, shape index: {}]   ;;  %s2207_s2 = inlined_call_operand.vmem [shape: f32[128,128], index: 2, kind: input, shape index: {}]   ;;  %s2208_s0 = inlined_call_operand.vmem [shape: f32[64,128], index: 0, kind: input, shape index: {}]   ;;  %s2209_s3 = inlined_call_operand.vmem [shape: f32[1,128], index: 3, kind: input, shape index: {}]   ;;  %s2210_s4 = inlined_call_operand.vmem [shape: f32[128,128], index: 4, kind: input, shape index: {}]   ;;  %s2211_s5 = inlined_call_operand.vmem [shape: f32[1,128], index: 5, kind: input, shape index: {}]   ;;  %s2212_s6 = inlined_call_operand.vmem [shape: f32[64,128], index: 6, kind: output, shape index: {}]  }
   0x1   :  { %v31_v0 = vld [vmem:[%s2206_s1] sm:$0xff]  ;;  %v32_v1 = vld [vmem:[%s2206_s1 + $0x8] sm:$0xff]  ;;  %1524 = vmatprep.subr.bf16.mxu1 %v1767_v2  ;;  %1200 = vmatprep.mubr.msk.f32.mxu1 %vm1768_vm0, %v1769_v4  ;;  %v33_v7 = vld [vmem:[%s2206_s1 + $0x10] sm:$0xff] }
   0x2   :  { %v167_v3 = vld [vmem:[%s2207_s2] sm:$0xff]  ;;  %v1492_v5 = vpack.c.bf16 %v32_v1, %v31_v0  ;;  %v168_v6 = vld [vmem:[%s2207_s2 + $0x8] sm:$0xff]  ;;  %v34_v8 = vld [vmem:[%s2206_s1 + $0x18] sm:$0xff] }
   0x3   :  { %v1826_v9 = vpack.c.bf16 %v168_v6, %v167_v3  ;;  %v1496_v10 = vpack.c.bf16 %v34_v8, %v33_v7  ;;  %v169_v11 = vld [vmem:[%s2207_s2 + $0x10] sm:$0xff]  ;;  %v170_v12 = vld [vmem:[%s2207_s2 + $0x18] sm:$0xff]  ;;  %v35_v13 = vld [vmem:[%s2206_s1 + $0x20] sm:$0xff] }
   0x4   :  { %1493 = vmatprep.subr.bf16.mxu0 %v1492_v5  ;;  %v36_v14 = vld [vmem:[%s2206_s1 + $0x28] sm:$0xff]  ;;  %v1841_v15 = vpack.c.bf16 %v170_v12, %v169_v11  ;;  %v171_v17 = vld [vmem:[%s2207_s2 + $0x20] sm:$0xff]  ;;  %v37_v19 = vld [vmem:[%s2206_s1 + $0x30] sm:$0xff] }
   0x5   :  { %1495 = vmatpush3.bf16.msra.mxu0 %v1492_v5  ;;  %1526 = vmatpush3.bf16.msra.mxu1 %v1826_v9  ;;  %v1500_v16 = vpack.c.bf16 %v36_v14, %v35_v13  ;;  %v172_v18 = vld [vmem:[%s2207_s2 + $0x28] sm:$0xff]  ;;  %v38_v20 = vld [vmem:[%s2206_s1 + $0x38] sm:$0xff]  ;;  %v173_v23 = vld [vmem:[%s2207_s2 + $0x30] sm:$0xff] }
   0x6   :  { %1497 = vmatprep.subr.bf16.mxu0 %v1496_v10  ;;  %1527 = vmatprep.subr.bf16.mxu1 %v1767_v2  ;;  %v1857_v21 = vpack.c.bf16 %v172_v18, %v171_v17  ;;  %v1504_v22 = vpack.c.bf16 %v38_v20, %v37_v19  ;;  %v174_v24 = vld [vmem:[%s2207_s2 + $0x38] sm:$0xff]  ;;  %v39_v25 = vld [vmem:[%s2206_s1 + $0x40] sm:$0xff]  ;;  %v40_v26 = vld [vmem:[%s2206_s1 + $0x48] sm:$0xff] }
   0x7   :  { %v23_v27 = vld [vmem:[%s2208_s0] sm:$0xff]  ;;  %v1876_v28 = vpack.c.bf16 %v174_v24, %v173_v23  ;;  %v1508_v29 = vpack.c.bf16 %v40_v26, %v39_v25  ;;  %v176_v31 = vld [vmem:[%s2207_s2 + $0x48] sm:$0xff]  ;;  %v41_v32 = vld [vmem:[%s2206_s1 + $0x50] sm:$0xff] }
   0x8   :  { %1156 = vmatprep.mubr.f32.mxu0 %v23_v27  ;;  %v175_v30 = vld [vmem:[%s2207_s2 + $0x40] sm:$0xff]  ;;  %v42_v33 = vld [vmem:[%s2206_s1 + $0x58] sm:$0xff]  ;;  %v177_v36 = vld [vmem:[%s2207_s2 + $0x50] sm:$0xff] }
   0x9   :  { %1499 = vmatpush3.bf16.msra.mxu0 %v1496_v10  ;;  %1529 = vmatpush3.bf16.msra.mxu1 %v1841_v15  ;;  %v1892_v34 = vpack.c.bf16 %v176_v31, %v175_v30  ;;  %v1512_v35 = vpack.c.bf16 %v42_v33, %v41_v32  ;;  %v178_v37 = vld [vmem:[%s2207_s2 + $0x58] sm:$0xff]  ;;  %v43_v38 = vld [vmem:[%s2206_s1 + $0x60] sm:$0xff]  ;;  %v44_v39 = vld [vmem:[%s2206_s1 + $0x68] sm:$0xff] }
   0xa   :  { %1501 = vmatprep.subr.bf16.mxu0 %v1500_v16  ;;  %1530 = vmatprep.subr.bf16.mxu1 %v1767_v2  ;;  %v1908_v40 = vpack.c.bf16 %v178_v37, %v177_v36  ;;  %v1516_v41 = vpack.c.bf16 %v44_v39, %v43_v38  ;;  %v179_v42 = vld [vmem:[%s2207_s2 + $0x60] sm:$0xff]  ;;  %v180_v43 = vld [vmem:[%s2207_s2 + $0x68] sm:$0xff]  ;;  %v45_v44 = vld [vmem:[%s2206_s1 + $0x70] sm:$0xff] }
   0xb   :  { %v46_v45 = vld [vmem:[%s2206_s1 + $0x78] sm:$0xff]  ;;  %v1924_v46 = vpack.c.bf16 %v180_v43, %v179_v42  ;;  %v181_v48 = vld [vmem:[%s2207_s2 + $0x70] sm:$0xff]  ;;  %v24_v51 = vld [vmem:[%s2208_s0 + $0x8] sm:$0xff] }
   0xc   :  { %v1520_v47 = vpack.c.bf16 %v46_v45, %v45_v44  ;;  %v182_v49 = vld [vmem:[%s2207_s2 + $0x78] sm:$0xff]  ;;  %v25_v52 = vld [vmem:[%s2208_s0 + $0x10] sm:$0xff]  ;;  %v27_v54 = vld [vmem:[%s2208_s0 + $0x20] sm:$0xff] }
   0xd   :  { %1503 = vmatpush3.bf16.msra.mxu0 %v1500_v16  ;;  %1532 = vmatpush3.bf16.msra.mxu1 %v1857_v21  ;;  %v1934_v50 = vpack.c.bf16 %v182_v49, %v181_v48  ;;  %v26_v53 = vld [vmem:[%s2208_s0 + $0x18] sm:$0xff]  ;;  %v28_v55 = vld [vmem:[%s2208_s0 + $0x28] sm:$0xff]  ;;  %v29_v56 = vld [vmem:[%s2208_s0 + $0x30] sm:$0xff] }
   0xe   :  { %1505 = vmatprep.subr.bf16.mxu0 %v1504_v22  ;;  %1533 = vmatprep.subr.bf16.mxu1 %v1767_v2  ;;  %v30_v57 = vld [vmem:[%s2208_s0 + $0x38] sm:$0xff]  ;;  %v2001_v58 = vld [vmem:[%s2209_s3] ss:$0 sm:$0xff]  ;;  %v796_v42 = vld [vmem:[%s2210_s4 + $0x30] sm:$0xff] }
   0xf   :  { %v793_v36 = vld [vmem:[%s2210_s4 + $0x18] sm:$0xff]  ;;  %v794_v39 = vld [vmem:[%s2210_s4 + $0x20] sm:$0xff]  ;;  %v800_v48 = vld [vmem:[%s2210_s4 + $0x50] sm:$0xff] }
  0x10   :  { %v797_v43 = vld [vmem:[%s2210_s4 + $0x38] sm:$0xff]  ;;  %v798_v45 = vld [vmem:[%s2210_s4 + $0x40] sm:$0xff] }
  0x11   :  { %1507 = vmatpush3.bf16.msra.mxu0 %v1504_v22  ;;  %1535 = vmatpush3.bf16.msra.mxu1 %v1876_v28  ;;  %v1728_v44 = vpack.c.bf16 %v797_v43, %v796_v42  ;;  %v801_v49 = vld [vmem:[%s2210_s4 + $0x58] sm:$0xff] }
  0x12   :  { %1509 = vmatprep.subr.bf16.mxu0 %v1508_v29  ;;  %1536 = vmatprep.subr.bf16.mxu1 %v1767_v2 }
  0x15   :  { %1511 = vmatpush3.bf16.msra.mxu0 %v1508_v29  ;;  %1538 = vmatpush3.bf16.msra.mxu1 %v1892_v34 }
  0x16   :  { %1513 = vmatprep.subr.bf16.mxu0 %v1512_v35  ;;  %1539 = vmatprep.subr.bf16.mxu1 %v1767_v2 }
  0x19   :  { %1515 = vmatpush3.bf16.msra.mxu0 %v1512_v35  ;;  %1541 = vmatpush3.bf16.msra.mxu1 %v1908_v40 }
  0x1a   :  { %1517 = vmatprep.subr.bf16.mxu0 %v1516_v41  ;;  %1542 = vmatprep.subr.bf16.mxu1 %v1767_v2 }
  0x1d   :  { %1519 = vmatpush3.bf16.msra.mxu0 %v1516_v41  ;;  %1544 = vmatpush3.bf16.msra.mxu1 %v1924_v46 }
  0x1e   :  { %1521 = vmatprep.subr.bf16.mxu0 %v1520_v47  ;;  %1545 = vmatprep.subr.bf16.mxu1 %v1767_v2 }
  0x21   :  { %1523 = vmatpush3.bf16.msra.mxu0 %v1520_v47  ;;  %1547 = vmatpush3.bf16.msra.mxu1 %v1934_v50 }
  0x22   :  { %1548 = vmatprep.subr.bf16.mxu0 %v1767_v2  ;;  %1572 = vmatprep.subr.bf16.mxu1 %v1767_v2 }
  0x24   :  { %1157 = vmatmul.mubr.f32.vlgmr.msra.gmra.mrb[0].mxu0 %v24_v51  ;;  %1201 = vmatmul.mubr.f32.vlgmr.msra.gmra.mrb[0].mxu1 %v1769_v4  ;;  %v802_v51 = vld [vmem:[%s2210_s4 + $0x60] sm:$0xff] }
  0x25   :  { %1550 = vmatpush3.bf16.msra.mxu0 %v1826_v9  ;;  %1574 = vmatpush3.bf16.msra.mxu1 %v1826_v9 }
  0x26   :  { %1551 = vmatprep.subr.bf16.mxu0 %v1767_v2  ;;  %1575 = vmatprep.subr.bf16.mxu1 %v1767_v2 }
  0x27   :  { %1270 = vmatprep.mubr.msk.f32.mxu1 %vm1768_vm0, %v1769_v4  ;;  %1159 = vmatprep.mubr.f32.mxu0 %v25_v52  ;;  %v803_v52 = vld [vmem:[%s2210_s4 + $0x68] sm:$0xff] }
  0x28   :  { %1160 = vmatmul.mubr.f32.gmra.mrb[2].mxu0 %v26_v53  ;;  %v1740_v53 = vpack.c.bf16 %v803_v52, %v802_v51 }
  0x29   :  { %1553 = vmatpush3.bf16.msra.mxu0 %v1841_v15  ;;  %1577 = vmatpush3.bf16.msra.mxu1 %v1841_v15 }
  0x2a   :  { %1554 = vmatprep.subr.bf16.mxu0 %v1767_v2  ;;  %1578 = vmatprep.subr.bf16.mxu1 %v1767_v2 }
  0x2b   :  { %1162 = vmatprep.mubr.f32.mxu0 %v27_v54  ;;  %v804_v54 = vld [vmem:[%s2210_s4 + $0x70] sm:$0xff] }
  0x2c   :  { %1163 = vmatmul.mubr.f32.gmra.mrb[4].mxu0 %v28_v55  ;;  %v805_v55 = vld [vmem:[%s2210_s4 + $0x78] sm:$0xff] }
  0x2d   :  { %1556 = vmatpush3.bf16.msra.mxu0 %v1857_v21  ;;  %1580 = vmatpush3.bf16.msra.mxu1 %v1857_v21 }
  0x2e   :  { %1557 = vmatprep.subr.bf16.mxu0 %v1767_v2  ;;  %1581 = vmatprep.subr.bf16.mxu1 %v1767_v2 }
  0x2f   :  { %1165 = vmatprep.mubr.f32.mxu0 %v29_v56  ;;  %v1744_v56 = vpack.c.bf16 %v805_v55, %v804_v54 }
  0x30   :  { %1166 = vmatmul.mubr.f32.gmra.mrb[6].mxu0 %v30_v57 }
  0x31   :  { %1559 = vmatpush3.bf16.msra.mxu0 %v1876_v28  ;;  %1583 = vmatpush3.bf16.msra.mxu1 %v1876_v28 }
  0x32   :  { %1560 = vmatprep.subr.bf16.mxu0 %v1767_v2  ;;  %1584 = vmatprep.subr.bf16.mxu1 %v1767_v2 }
  0x33   :  { %1235 = vmatprep.mubr.msk.f32.mxu0 %vm1768_vm0, %v1769_v4 }
  0x35   :  { %1562 = vmatpush3.bf16.msra.mxu0 %v1892_v34  ;;  %1586 = vmatpush3.bf16.msra.mxu1 %v1892_v34 }
  0x36   :  { %1563 = vmatprep.subr.bf16.mxu0 %v1767_v2  ;;  %1587 = vmatprep.subr.bf16.mxu1 %v1767_v2 }
  0x39   :  { %1565 = vmatpush3.bf16.msra.mxu0 %v1908_v40  ;;  %1589 = vmatpush3.bf16.msra.mxu1 %v1908_v40 }
  0x3a   :  { %1566 = vmatprep.subr.bf16.mxu0 %v1767_v2  ;;  %1590 = vmatprep.subr.bf16.mxu1 %v1767_v2 }
  0x3d   :  { %1568 = vmatpush3.bf16.msra.mxu0 %v1924_v46  ;;  %1592 = vmatpush3.bf16.msra.mxu1 %v1924_v46 }
  0x3e   :  { %1569 = vmatprep.subr.bf16.mxu0 %v1767_v2  ;;  %1593 = vmatprep.subr.bf16.mxu1 %v1767_v2 }
  0x41   :  { %1571 = vmatpush3.bf16.msra.mxu0 %v1934_v50  ;;  %1595 = vmatpush3.bf16.msra.mxu1 %v1934_v50 }
  0x42   :  { %1596 = vmatprep.subr.bf16.mxu0 %v1767_v2  ;;  %1620 = vmatprep.subr.bf16.mxu1 %v1767_v2 }
  0xf7   :  { %v1158_v59 = vpop.f32.mrb[0].mxu0  ;;  %v250_v60 = vpop.f32.mrb[0].mxu1 }
  0xf8   :  { %v120_v61 = vpop.f32.mrb[1].mxu0  ;;  %v1202_v62 = vpop.f32.mrb[1].mxu1  ;;  %v126_v11 = vadd.f32 %v1158_v59, %v2001_v58 }
  0xf9   :  { %v121_v63 = vadd.f32 %v2001_v58, %v120_v61 }
  0xfb   :  { %v254_v0 = vadd.f32 %v250_v60, %v121_v63  ;;  %v1161_v3 = vpop.f32.mrb[2].mxu0  ;;  %v939_v63 = vld [vmem:[%s2211_s5] ss:$0 sm:$0xff] }
  0xfc   :  { %v130_v5 = vpop.f32.mrb[3].mxu0  ;;  %v136_v23 = vadd.f32 %v1161_v3, %v2001_v58 }
  0xfd   :  { %1751 = vtanh.f32 %v254_v0  ;;  %v131_v17 = vadd.f32 %v2001_v58, %v130_v5 }
  0xff   :  { %v2025_v6 = vpop.f32.mrb[4].mxu0 }
 0x100   :  { %v2027_v7 = vpop.f32.mrb[5].mxu0 }
 0x101   :  { %v141_v29 = vadd.f32 %v2001_v58, %v2027_v7 }
 0x103   :  { %v2029_v8 = vpop.f32.mrb[6].mxu0 }
 0x104   :  { %v2031_v10 = vpop.f32.mrb[7].mxu0 }
 0x105   :  { %v151_v57 = vadd.f32 %v2001_v58, %v2031_v10 }
 0x107   :  { %v2004_v1 = vpop.eup %1751 }
 0x108   :  { %1236 = vmatmul.mubr.f32.vlgmr.msra.gmra.mrb[8].mxu0 %v2004_v1 }
 0x109   :  { %1598 = vmatpush3.bf16.msra.mxu0 %v1826_v9  ;;  %1305 = vmatprep.mubr.msk.f32.mxu0 %vm1768_vm0, %v1769_v4 }
 0x10a   :  { %1599 = vmatprep.subr.bf16.mxu0 %v1767_v2 }
 0x10d   :  { %1601 = vmatpush3.bf16.msra.mxu0 %v1841_v15 }
 0x10e   :  { %1602 = vmatprep.subr.bf16.mxu0 %v1767_v2 }
 0x111   :  { %1604 = vmatpush3.bf16.msra.mxu0 %v1857_v21 }
 0x112   :  { %1605 = vmatprep.subr.bf16.mxu0 %v1767_v2 }
 0x115   :  { %1607 = vmatpush3.bf16.msra.mxu0 %v1876_v28 }
 0x116   :  { %1608 = vmatprep.subr.bf16.mxu0 %v1767_v2 }
 0x119   :  { %1610 = vmatpush3.bf16.msra.mxu0 %v1892_v34 }
 0x11a   :  { %1611 = vmatprep.subr.bf16.mxu0 %v1767_v2 }
 0x11d   :  { %1613 = vmatpush3.bf16.msra.mxu0 %v1908_v40 }
 0x11e   :  { %1614 = vmatprep.subr.bf16.mxu0 %v1767_v2 }
 0x121   :  { %1616 = vmatpush3.bf16.msra.mxu0 %v1924_v46 }
 0x122   :  { %1617 = vmatprep.subr.bf16.mxu0 %v1767_v2 }
 0x125   :  { %1619 = vmatpush3.bf16.msra.mxu0 %v1934_v50 }
 0x126   :  { %1644 = vmatprep.subr.bf16.mxu0 %v1767_v2 }
 0x1db   :  { %v325_v12 = vpop.f32.mrb[8].mxu0 }
 0x1dc   :  { %v329_v13 = vadd.f32 %v325_v12, %v126_v11  ;;  %v1237_v14 = vpop.f32.mrb[9].mxu0 }
 0x1de   :  { %1753 = vtanh.f32 %v329_v13 }
 0x1e8   :  { %v2034_v16 = vpop.eup %1753 }
 0x1e9   :  { %1271 = vmatmul.mubr.f32.vlgmr.msra.gmra.mrb[2].mxu1 %v2034_v16 }
 0x1ea   :  { %1622 = vmatpush3.bf16.msra.mxu1 %v1826_v9  ;;  %1340 = vmatprep.mubr.msk.f32.mxu1 %vm1768_vm0, %v1769_v4 }
 0x1eb   :  { %1623 = vmatprep.subr.bf16.mxu1 %v1767_v2 }
 0x1ee   :  { %1625 = vmatpush3.bf16.msra.mxu1 %v1841_v15 }
 0x1ef   :  { %1626 = vmatprep.subr.bf16.mxu1 %v1767_v2 }
 0x1f2   :  { %1628 = vmatpush3.bf16.msra.mxu1 %v1857_v21 }
 0x1f3   :  { %1629 = vmatprep.subr.bf16.mxu1 %v1767_v2 }
 0x1f6   :  { %1631 = vmatpush3.bf16.msra.mxu1 %v1876_v28 }
 0x1f7   :  { %1632 = vmatprep.subr.bf16.mxu1 %v1767_v2 }
 0x1fa   :  { %1634 = vmatpush3.bf16.msra.mxu1 %v1892_v34 }
 0x1fb   :  { %1635 = vmatprep.subr.bf16.mxu1 %v1767_v2 }
 0x1fe   :  { %1637 = vmatpush3.bf16.msra.mxu1 %v1908_v40 }
 0x1ff   :  { %1638 = vmatprep.subr.bf16.mxu1 %v1767_v2 }
 0x202   :  { %1640 = vmatpush3.bf16.msra.mxu1 %v1924_v46 }
 0x203   :  { %1641 = vmatprep.subr.bf16.mxu1 %v1767_v2 }
 0x206   :  { %1643 = vmatpush3.bf16.msra.mxu1 %v1934_v50 }
 0x207   :  { %1668 = vmatprep.subr.bf16.mxu1 %v1767_v2 }
 0x2bc   :  { %v400_v18 = vpop.f32.mrb[2].mxu1 }
 0x2bd   :  { %v404_v19 = vadd.f32 %v400_v18, %v131_v17  ;;  %v1272_v20 = vpop.f32.mrb[3].mxu1 }
 0x2bf   :  { %1755 = vtanh.f32 %v404_v19 }
 0x2c9   :  { %v2056_v22 = vpop.eup %1755 }
 0x2ca   :  { %1306 = vmatmul.mubr.f32.vlgmr.msra.gmra.mrb[10].mxu0 %v2056_v22 }
 0x2cb   :  { %1646 = vmatpush3.bf16.msra.mxu0 %v1826_v9  ;;  %1375 = vmatprep.mubr.msk.f32.mxu0 %vm1768_vm0, %v1769_v4 }
 0x2cc   :  { %1647 = vmatprep.subr.bf16.mxu0 %v1767_v2 }
 0x2cf   :  { %1649 = vmatpush3.bf16.msra.mxu0 %v1841_v15 }
 0x2d0   :  { %1650 = vmatprep.subr.bf16.mxu0 %v1767_v2 }
 0x2d3   :  { %1652 = vmatpush3.bf16.msra.mxu0 %v1857_v21 }
 0x2d4   :  { %1653 = vmatprep.subr.bf16.mxu0 %v1767_v2 }
 0x2d7   :  { %1655 = vmatpush3.bf16.msra.mxu0 %v1876_v28 }
 0x2d8   :  { %1656 = vmatprep.subr.bf16.mxu0 %v1767_v2 }
 0x2db   :  { %1658 = vmatpush3.bf16.msra.mxu0 %v1892_v34 }
 0x2dc   :  { %1659 = vmatprep.subr.bf16.mxu0 %v1767_v2 }
 0x2df   :  { %1661 = vmatpush3.bf16.msra.mxu0 %v1908_v40 }
 0x2e0   :  { %1662 = vmatprep.subr.bf16.mxu0 %v1767_v2 }
 0x2e3   :  { %1664 = vmatpush3.bf16.msra.mxu0 %v1924_v46 }
 0x2e4   :  { %1665 = vmatprep.subr.bf16.mxu0 %v1767_v2 }
 0x2e7   :  { %1667 = vmatpush3.bf16.msra.mxu0 %v1934_v50 }
 0x2e8   :  { %1692 = vmatprep.subr.bf16.mxu0 %v1767_v2 }
 0x39d   :  { %v475_v24 = vpop.f32.mrb[10].mxu0 }
 0x39e   :  { %v479_v25 = vadd.f32 %v475_v24, %v136_v23  ;;  %v1307_v26 = vpop.f32.mrb[11].mxu0  ;;  %v156_v24 = vadd.f32 %v2029_v8, %v2001_v58 }
 0x3a0   :  { %1757 = vtanh.f32 %v479_v25 }
 0x3aa   :  { %v2078_v27 = vpop.eup %1757 }
 0x3ab   :  { %1341 = vmatmul.mubr.f32.vlgmr.msra.gmra.mrb[4].mxu1 %v2078_v27 }
 0x3ac   :  { %1670 = vmatpush3.bf16.msra.mxu1 %v1826_v9  ;;  %1410 = vmatprep.mubr.msk.f32.mxu1 %vm1768_vm0, %v1769_v4 }
 0x3ad   :  { %1671 = vmatprep.subr.bf16.mxu1 %v1767_v2 }
 0x3b0   :  { %1673 = vmatpush3.bf16.msra.mxu1 %v1841_v15 }
 0x3b1   :  { %1674 = vmatprep.subr.bf16.mxu1 %v1767_v2 }
 0x3b4   :  { %1676 = vmatpush3.bf16.msra.mxu1 %v1857_v21 }
 0x3b5   :  { %1677 = vmatprep.subr.bf16.mxu1 %v1767_v2 }
 0x3b8   :  { %1679 = vmatpush3.bf16.msra.mxu1 %v1876_v28 }
 0x3b9   :  { %1680 = vmatprep.subr.bf16.mxu1 %v1767_v2 }
 0x3bc   :  { %1682 = vmatpush3.bf16.msra.mxu1 %v1892_v34 }
 0x3bd   :  { %1683 = vmatprep.subr.bf16.mxu1 %v1767_v2 }
 0x3c0   :  { %1685 = vmatpush3.bf16.msra.mxu1 %v1908_v40 }
 0x3c1   :  { %1686 = vmatprep.subr.bf16.mxu1 %v1767_v2 }
 0x3c4   :  { %1688 = vmatpush3.bf16.msra.mxu1 %v1924_v46 }
 0x3c5   :  { %1689 = vmatprep.subr.bf16.mxu1 %v1767_v2 }
 0x3c8   :  { %1691 = vmatpush3.bf16.msra.mxu1 %v1934_v50 }
 0x47e   :  { %v550_v30 = vpop.f32.mrb[4].mxu1 }
 0x47f   :  { %v554_v31 = vadd.f32 %v550_v30, %v141_v29  ;;  %v1342_v32 = vpop.f32.mrb[5].mxu1 }
 0x481   :  { %1759 = vtanh.f32 %v554_v31 }
 0x48b   :  { %v2100_v33 = vpop.eup %1759 }
 0x48c   :  { %1376 = vmatmul.mubr.f32.vlgmr.msra.gmra.mrb[12].mxu0 %v2100_v33 }
 0x48d   :  { %1694 = vmatpush3.bf16.msra.mxu0 %v1826_v9  ;;  %1445 = vmatprep.mubr.msk.f32.mxu0 %vm1768_vm0, %v1769_v4  ;;  %v790_v4 = vld [vmem:[%s2210_s4] sm:$0xff]  ;;  %v791_v9 = vld [vmem:[%s2210_s4 + $0x8] sm:$0xff] }
 0x48e   :  { %1695 = vmatprep.subr.bf16.mxu0 %v1767_v2 }
 0x491   :  { %1697 = vmatpush3.bf16.msra.mxu0 %v1841_v15  ;;  %v1716_v15 = vpack.c.bf16 %v791_v9, %v790_v4 }
 0x492   :  { %1698 = vmatprep.subr.bf16.mxu0 %v1767_v2 }
 0x493   :  { %1717 = vmatprep.subr.bf16.mxu1 %v1716_v15 }
 0x495   :  { %1700 = vmatpush3.bf16.msra.mxu0 %v1857_v21  ;;  %v146_v21 = vadd.f32 %v2025_v6, %v2001_v58 }
 0x496   :  { %1701 = vmatprep.subr.bf16.mxu0 %v1767_v2 }
 0x499   :  { %1703 = vmatpush3.bf16.msra.mxu0 %v1876_v28 }
 0x49a   :  { %1704 = vmatprep.subr.bf16.mxu0 %v1767_v2 }
 0x49d   :  { %1706 = vmatpush3.bf16.msra.mxu0 %v1892_v34 }
 0x49e   :  { %1707 = vmatprep.subr.bf16.mxu0 %v1767_v2 }
 0x4a1   :  { %1709 = vmatpush3.bf16.msra.mxu0 %v1908_v40  ;;  %v795_v40 = vld [vmem:[%s2210_s4 + $0x28] sm:$0xff] }
 0x4a2   :  { %1710 = vmatprep.subr.bf16.mxu0 %v1767_v2  ;;  %v1724_v41 = vpack.c.bf16 %v795_v40, %v794_v39 }
 0x4a5   :  { %1712 = vmatpush3.bf16.msra.mxu0 %v1924_v46  ;;  %v799_v46 = vld [vmem:[%s2210_s4 + $0x48] sm:$0xff] }
 0x4a6   :  { %1713 = vmatprep.subr.bf16.mxu0 %v1767_v2  ;;  %v792_v2 = vld [vmem:[%s2210_s4 + $0x10] sm:$0xff]  ;;  %v1732_v47 = vpack.c.bf16 %v799_v46, %v798_v45 }
 0x4a7   :  { %v1720_v37 = vpack.c.bf16 %v793_v36, %v792_v2 }
 0x4a9   :  { %1715 = vmatpush3.bf16.msra.mxu0 %v1934_v50  ;;  %v1736_v50 = vpack.c.bf16 %v801_v49, %v800_v48 }
 0x55f   :  { %v625_v28 = vpop.f32.mrb[12].mxu0 }
 0x560   :  { %v629_v34 = vadd.f32 %v625_v28, %v146_v21  ;;  %v1377_v35 = vpop.f32.mrb[13].mxu0 }
 0x562   :  { %1761 = vtanh.f32 %v629_v34 }
 0x56c   :  { %v1762_v38 = vpop.eup %1761 }
 0x56d   :  { %1411 = vmatmul.mubr.f32.vlgmr.msra.gmra.mrb[6].mxu1 %v1762_v38 }
 0x56e   :  { %1719 = vmatpush3.bf16.msra.mxu1 %v1716_v15  ;;  %1480 = vmatprep.mubr.f32.mxu1 %v2004_v1 }
 0x56f   :  { %1721 = vmatprep.subr.bf16.mxu1 %v1720_v37 }
 0x572   :  { %1723 = vmatpush3.bf16.msra.mxu1 %v1720_v37 }
 0x573   :  { %1725 = vmatprep.subr.bf16.mxu1 %v1724_v41 }
 0x576   :  { %1727 = vmatpush3.bf16.msra.mxu1 %v1724_v41 }
 0x577   :  { %1729 = vmatprep.subr.bf16.mxu1 %v1728_v44 }
 0x57a   :  { %1731 = vmatpush3.bf16.msra.mxu1 %v1728_v44 }
 0x57b   :  { %1733 = vmatprep.subr.bf16.mxu1 %v1732_v47 }
 0x57e   :  { %1735 = vmatpush3.bf16.msra.mxu1 %v1732_v47 }
 0x57f   :  { %1737 = vmatprep.subr.bf16.mxu1 %v1736_v50 }
 0x582   :  { %1739 = vmatpush3.bf16.msra.mxu1 %v1736_v50 }
 0x583   :  { %1741 = vmatprep.subr.bf16.mxu1 %v1740_v53 }
 0x586   :  { %1743 = vmatpush3.bf16.msra.mxu1 %v1740_v53 }
 0x587   :  { %1745 = vmatprep.subr.bf16.mxu1 %v1744_v56 }
 0x58a   :  { %1747 = vmatpush3.bf16.msra.mxu1 %v1744_v56 }
 0x58d   :  { %1481 = vmatmul.mubr.f32.vlgmr.msra.gmra.mrb[8].mxu1 %v2034_v16 }
 0x58e   :  { %1483 = vmatprep.mubr.f32.mxu1 %v2056_v22 }
 0x591   :  { %1484 = vmatmul.mubr.f32.gmra.mrb[10].mxu1 %v2078_v27 }
 0x592   :  { %1486 = vmatprep.mubr.f32.mxu1 %v2100_v33 }
 0x595   :  { %1487 = vmatmul.mubr.f32.gmra.mrb[12].mxu1 %v1762_v38 }
 0x640   :  { %v700_v59 = vpop.f32.mrb[6].mxu1 }
 0x641   :  { %v704_v60 = vadd.f32 %v700_v59, %v151_v57  ;;  %v1412_v61 = vpop.f32.mrb[7].mxu1 }
 0x643   :  { %1763 = vtanh.f32 %v704_v60 }
 0x64d   :  { %v1764_v62 = vpop.eup %1763 }
 0x64e   :  { %1446 = vmatmul.mubr.f32.vlgmr.msra.gmra.mrb[14].mxu0 %v1764_v62  ;;  %1489 = vmatprep.mubr.f32.mxu1 %v1764_v62 }
 0x660   :  { %v1482_v0 = vpop.f32.mrb[8].mxu1 }
 0x661   :  { %v885_v1 = vadd.f32 %v1482_v0, %v939_v63  ;;  %v879_v3 = vpop.f32.mrb[9].mxu1 }
 0x662   :  { %v880_v5 = vadd.f32 %v939_v63, %v879_v3 }
 0x663   :  { %v919_v6 = vmax.f32 %v885_v1, 0.0 }
 0x664   :  { %v918_v7 = vmax.f32 %v880_v5, 0.0  ;;  %v1485_v11 = vpop.f32.mrb[10].mxu1 }
 0x665   :  { %927 = vst [vmem:[%s2212_s6 + $0x8] sm:$0xff] %v919_v6  ;;  %v895_v10 = vadd.f32 %v1485_v11, %v939_v63  ;;  %v889_v12 = vpop.f32.mrb[11].mxu1 }
 0x666   :  { %926 = vst [vmem:[%s2212_s6] sm:$0xff] %v918_v7  ;;  %v890_v13 = vadd.f32 %v939_v63, %v889_v12 }
 0x667   :  { %v921_v14 = vmax.f32 %v895_v10, 0.0 }
 0x668   :  { %v920_v16 = vmax.f32 %v890_v13, 0.0  ;;  %v1488_v17 = vpop.f32.mrb[12].mxu1 }
 0x669   :  { %929 = vst [vmem:[%s2212_s6 + $0x18] sm:$0xff] %v921_v14  ;;  %v905_v18 = vadd.f32 %v1488_v17, %v939_v63  ;;  %v899_v19 = vpop.f32.mrb[13].mxu1 }
 0x66a   :  { %928 = vst [vmem:[%s2212_s6 + $0x10] sm:$0xff] %v920_v16  ;;  %v900_v20 = vadd.f32 %v939_v63, %v899_v19 }
 0x66b   :  { %v923_v22 = vmax.f32 %v905_v18, 0.0 }
 0x66c   :  { %v922_v23 = vmax.f32 %v900_v20, 0.0 }
 0x66d   :  { %931 = vst [vmem:[%s2212_s6 + $0x28] sm:$0xff] %v923_v22 }
 0x66e   :  { %930 = vst [vmem:[%s2212_s6 + $0x20] sm:$0xff] %v922_v23 }
 0x721   :  { %v775_v25 = vpop.f32.mrb[14].mxu0 }
 0x722   :  { %v779_v26 = vadd.f32 %v775_v25, %v156_v24  ;;  %v1447_v27 = vpop.f32.mrb[15].mxu0 }
 0x724   :  { %1765 = vtanh.f32 %v779_v26 }
 0x72e   :  { %v1766_v29 = vpop.eup %1765 }
 0x72f   :  { %1490 = vmatmul.mubr.f32.gmra.mrb[14].mxu1 %v1766_v29 }
 0x802   :  { %v1491_v30 = vpop.f32.mrb[14].mxu1 }
 0x803   :  { %v915_v31 = vadd.f32 %v1491_v30, %v939_v63  ;;  %v909_v32 = vpop.f32.mrb[15].mxu1 }
 0x804   :  { %v910_v33 = vadd.f32 %v939_v63, %v909_v32 }
 0x805   :  { %v925_v4 = vmax.f32 %v915_v31, 0.0 }
 0x806   :  { %v924_v9 = vmax.f32 %v910_v33, 0.0 }
 0x807   :  { %933 = vst [vmem:[%s2212_s6 + $0x38] sm:$0xff] %v925_v4 }
 0x808   :  { %932 = vst [vmem:[%s2212_s6 + $0x30] sm:$0xff] %v924_v9 }

</bundles_post_ra>
